<compile_context>
chip_gen: v7x
topology: tpu7x:2x2x1
jax: 0.10.0
libtpu: 0.0.40
codegen_flags: <defaults>
</compile_context>

<pallas_src>
import functools
import math

import jax
import jax.numpy as jnp
from jax.experimental import pallas as pl
from jax.experimental.pallas import tpu as pltpu


def _encoder_stack_kernel(xpe_ref, bias_ref,
                          wqkv_ref, wo_ref,
                          ln1g_ref, ln1b_ref,
                          w1_ref, w2_ref,
                          ln2g_ref, ln2b_ref,
                          out_ref, attn_ref,
                          *, n_heads, d_k, d_v, batch_block, seq):
    """Grid step (bb, l) == encoder layer l applied to batch block bb (BB*S rows)."""
    H, B, S = n_heads, batch_block, seq
    N = B * S
    e = 2 * d_k + d_v
    f32, bf16 = jnp.float32, jnp.bfloat16

    # ---- layer 0 (per batch block): seed the resident activation (carried in out_ref
    #      across the layer axis) with the wrapper-precomputed x + positional encoding ---
    @pl.when(pl.program_id(1) == 0)
    def _init():
        out_ref[...] = xpe_ref[...]

    act = out_ref[...]                                       # (N, D) f32, VMEM-resident
    act_b = act.astype(bf16)

    # ---- QKV: one wide MXU matmul; columns = per-head [Wq/sqrt(d_k) | Wk | Wv] --------
    qkv = jnp.dot(act_b, wqkv_ref[0], preferred_element_type=f32)      # (N, H*e) f32
    qkv = qkv.reshape(B, S, H * e)
    # (B, S, H*e) -> (B*H, S, e): per-head lane slices stacked on a new head axis
    qkv_h = jnp.stack([qkv[:, :, h * e:(h + 1) * e] for h in range(H)],
                      axis=1).reshape(B * H, S, e)
    q = qkv_h[..., :d_k].astype(bf16)                        # scale already folded in
    k = qkv_h[..., d_k:2 * d_k].astype(bf16)
    v = qkv_h[..., 2 * d_k:].astype(bf16)

    # ---- scaled-dot-product attention, all (batch, head) pairs batched on the MXU -----
    scores = jnp.einsum('gqd,gkd->gqk', q, k,
                        preferred_element_type=f32).reshape(B, H, S, S)
    scores = scores + bias_ref[...][:, None, :, :]           # additive mask bias (bf16)
    m = jnp.max(scores, axis=-1, keepdims=True)
    p = jnp.exp(scores - m)
    denom = jnp.sum(p, axis=-1, keepdims=True)
    probs = p * pl.reciprocal(denom, approx=True)            # softmax (EUP reciprocal)
    probs_b = probs.astype(bf16)
    attn_ref[0] = probs_b                                    # bf16 slab writeback

    ctx = jnp.einsum('gqk,gkd->gqd', probs_b.reshape(B * H, S, S), v,
                     preferred_element_type=f32)             # (B*H, S, d_v) f32

    # ---- output projection: concat heads on the lane axis, one (N,H*dv) @ (H*dv,D) ----
    ctx = ctx.reshape(B, H, S, d_v)
    ctx = jnp.concatenate([ctx[:, h] for h in range(H)], axis=-1).reshape(N, H * d_v)
    attn_out = jnp.dot(ctx.astype(bf16), wo_ref[0],
                       preferred_element_type=f32) + act     # residual (f32)

    # ---- LayerNorm 1 (eps = 1e-5, PyTorch default) --------------------------------------
    mu1 = jnp.mean(attn_out, axis=-1, keepdims=True)
    var1 = jnp.mean((attn_out - mu1) ** 2, axis=-1, keepdims=True)
    y = (attn_out - mu1) * jax.lax.rsqrt(var1 + 1e-5) * ln1g_ref[0] + ln1b_ref[0]

    # ---- position-wise feed-forward + residual ------------------------------------------
    h1 = jnp.maximum(jnp.dot(y.astype(bf16), w1_ref[0],
                             preferred_element_type=f32), 0.0)          # (N, d_ff) f32
    ffn = jnp.dot(h1.astype(bf16), w2_ref[0],
                  preferred_element_type=f32) + y

    # ---- LayerNorm 2 ----------------------------------------------------------------------
    mu2 = jnp.mean(ffn, axis=-1, keepdims=True)
    var2 = jnp.mean((ffn - mu2) ** 2, axis=-1, keepdims=True)
    out_ref[...] = (ffn - mu2) * jax.lax.rsqrt(var2 + 1e-5) * ln2g_ref[0] + ln2b_ref[0]


def positional_encoding(seq_len, d_model):
    pos = jnp.arange(seq_len, dtype=jnp.float32)[:, None]                        # (S, 1)
    div = jnp.exp(jnp.arange(0, d_model, 2, dtype=jnp.float32)
                  * (-math.log(10000.0) / d_model))                              # (D/2,)
    pe_sin = jnp.sin(pos * div)
    pe_cos = jnp.cos(pos * div)
    return jnp.stack([pe_sin, pe_cos], axis=-1).reshape(seq_len, d_model)        # (S, D)


def init_params(key, d_model, d_ff, d_k, d_v, n_layers, n_heads):
    layers = []
    for l in range(n_layers):
        ks = jax.random.split(jax.random.fold_in(key, l), 6)

        def lin(k, fan_in, fan_out):
            return (jax.random.normal(k, (fan_in, fan_out), jnp.float32)
                    / math.sqrt(fan_in))

        layers.append({
            "wq": lin(ks[0], d_model, n_heads * d_k),
            "wk": lin(ks[1], d_model, n_heads * d_k),
            "wv": lin(ks[2], d_model, n_heads * d_v),
            "wo": lin(ks[3], n_heads * d_v, d_model),
            "ln1_g": jnp.ones((1, d_model), jnp.float32),
            "ln1_b": jnp.zeros((1, d_model), jnp.float32),
            "w1": lin(ks[4], d_model, d_ff),
            "w2": lin(ks[5], d_ff, d_model),
            "ln2_g": jnp.ones((1, d_model), jnp.float32),
            "ln2_b": jnp.zeros((1, d_model), jnp.float32),
        })
    return layers


def _prepare_stacked_params(layer_params, *, n_heads, d_k, d_v, mxu_dtype=jnp.bfloat16):
    """Stack per-layer weights on a leading layer dim.  QKV is one (D, H*(2*d_k+d_v))
    matrix (per-head [Wq/sqrt(d_k) | Wk | Wv] column blocks) -> single wide matmul in the
    kernel; Wo stays (H*d_v, D) -> single output-projection matmul over concatenated heads."""
    scale = 1.0 / math.sqrt(d_k)
    wqkv_l, wo_l, w1_l, w2_l = [], [], [], []
    g1_l, b1_l, g2_l, b2_l = [], [], [], []
    for p in layer_params:
        wq = p["wq"] * scale                                  # fold attention scale
        cols = []
        for h in range(n_heads):
            cols.append(jnp.concatenate(
                [wq[:, h * d_k:(h + 1) * d_k],
                 p["wk"][:, h * d_k:(h + 1) * d_k],
                 p["wv"][:, h * d_v:(h + 1) * d_v]], axis=1))   # (D, 2*d_k + d_v)
        wqkv_l.append(jnp.concatenate(cols, axis=1))          # (D, H*(2*d_k + d_v))
        wo_l.append(p["wo"])                                   # (H*d_v, D)
        w1_l.append(p["w1"]); w2_l.append(p["w2"])
        g1_l.append(p["ln1_g"]); b1_l.append(p["ln1_b"])
        g2_l.append(p["ln2_g"]); b2_l.append(p["ln2_b"])

    def st(xs, dt):
        return jnp.stack(xs, axis=0).astype(dt)

    return dict(
        wqkv=st(wqkv_l, mxu_dtype), wo=st(wo_l, mxu_dtype),
        w1=st(w1_l, mxu_dtype), w2=st(w2_l, mxu_dtype),
        ln1_g=st(g1_l, jnp.float32), ln1_b=st(b1_l, jnp.float32),
        ln2_g=st(g2_l, jnp.float32), ln2_b=st(b2_l, jnp.float32),
    )


def transformer_encoder(inputs, mask, layer_params, *, n_heads, d_k, d_v,
                        batch_block=None):
    """inputs: (B, S, D) f32; mask: (B, S, S) int (nonzero => masked key position).
    Returns (outputs (B, S, D) f32, list of per-layer attn probs (B, H, S, S) f32)."""
    B, S, D = inputs.shape
    L = len(layer_params)
    H = n_heads
    d_ff = layer_params[0]["w1"].shape[1]
    e = 2 * d_k + d_v
    BB = B if batch_block is None else batch_block            # batch rows per grid block
    assert B % BB == 0, "batch_block must divide the batch size"
    n_bb = B // BB

    # Wrapper-side prep: x + sinusoidal PE (folded out of the kernel), additive mask bias.
    pe = positional_encoding(S, D)                                       # (S, D) f32
    xpe = (inputs.astype(jnp.float32) + pe[None]).reshape(B * S, D)
    bias = jnp.where(mask != 0, -1e9, 0.0).astype(jnp.bfloat16)          # (B, S, S)
    sp = _prepare_stacked_params(layer_params, n_heads=H, d_k=d_k, d_v=d_v)

    kernel = functools.partial(_encoder_stack_kernel, n_heads=H, d_k=d_k, d_v=d_v,
                               batch_block=BB, seq=S)

    # VMEM budget from the actual shapes (double-buffered bf16 weights + resident act +
    # attention intermediates), clamped to fit every generation's physical VMEM.
    wbytes = 2 * 2 * (D * H * e + H * d_v * D + 2 * D * d_ff)
    abytes = 4 * BB * S * D * 3 + 2 * BB * S * S * 2 + 2 * BB * H * S * S * 2
    tbytes = 4 * BB * H * S * S * 4 + 4 * BB * S * max(H * e, d_ff) * 3
    vmem_limit = int(min(max(2 * (wbytes + abytes + tbytes), 32 * 2**20), 100 * 2**20))

    out_flat, attn_all = pl.pallas_call(
        kernel,
        grid=(n_bb, L),                     # (parallel batch blocks, sequential layers)
        in_specs=[
            pl.BlockSpec((BB * S, D), lambda bb, l: (bb, 0)),        # x + PE (layer 0 only)
            pl.BlockSpec((BB, S, S), lambda bb, l: (bb, 0, 0)),      # additive mask bias
            pl.BlockSpec((1, D, H * e), lambda bb, l: (l, 0, 0)),    # fused QKV weight
            pl.BlockSpec((1, H * d_v, D), lambda bb, l: (l, 0, 0)),  # output projection
            pl.BlockSpec((1, 1, D), lambda bb, l: (l, 0, 0)),        # ln1 gamma
            pl.BlockSpec((1, 1, D), lambda bb, l: (l, 0, 0)),        # ln1 beta
            pl.BlockSpec((1, D, d_ff), lambda bb, l: (l, 0, 0)),     # ffn W1
            pl.BlockSpec((1, d_ff, D), lambda bb, l: (l, 0, 0)),     # ffn W2
            pl.BlockSpec((1, 1, D), lambda bb, l: (l, 0, 0)),        # ln2 gamma
            pl.BlockSpec((1, 1, D), lambda bb, l: (l, 0, 0)),        # ln2 beta
        ],
        out_specs=[
            pl.BlockSpec((BB * S, D), lambda bb, l: (bb, 0)),             # resident activation
            pl.BlockSpec((1, BB, H, S, S), lambda bb, l: (l, bb, 0, 0, 0)),  # attn probs (bf16)
        ],
        out_shape=[
            jax.ShapeDtypeStruct((B * S, D), jnp.float32),
            jax.ShapeDtypeStruct((L, B, H, S, S), jnp.bfloat16),
        ],
        compiler_params=pltpu.CompilerParams(
            dimension_semantics=("parallel", "arbitrary"),
            vmem_limit_bytes=vmem_limit),
    )(xpe, bias,
      sp["wqkv"], sp["wo"],
      sp["ln1_g"], sp["ln1_b"],
      sp["w1"], sp["w2"],
      sp["ln2_g"], sp["ln2_b"])

    outputs = out_flat.reshape(B, S, D)
    attn_f32 = attn_all.astype(jnp.float32)
    attns = [attn_f32[l] for l in range(L)]                   # each (B, H, S, S)
    return outputs, attns


if __name__ == "__main__":
    # Small deterministic config: d_model=32, d_ff=64, d_q=d_k=16, d_v=16, n_layers=2, n_heads=2
    B, S = 2, 8
    d_model, d_ff, d_k, d_v, n_layers, n_heads = 32, 64, 16, 16, 2, 2

    key = jax.random.PRNGKey(0)
    k_x, k_p = jax.random.split(key)
    x = jax.random.normal(k_x, (B, S, d_model), jnp.float32)

    # Pad mask: batch 0 has full length 8, batch 1 has length 6 (positions 6,7 masked as keys).
    lengths = jnp.array([8, 6], dtype=jnp.int32)
    key_pad = (jnp.arange(S)[None, :] >= lengths[:, None]).astype(jnp.int32)     # (B, S)
    mask = jnp.broadcast_to(key_pad[:, None, :], (B, S, S)).astype(jnp.int32)    # (B, S, S)

    params = init_params(k_p, d_model, d_ff, d_k, d_v, n_layers, n_heads)

    out, attns = transformer_encoder(x, mask, params,
                                     n_heads=n_heads, d_k=d_k, d_v=d_v)
    jax.block_until_ready(out)
    for a in attns:
        jax.block_until_ready(a)

    # Shape checks (module semantics)
    assert out.shape == (B, S, d_model)
    assert len(attns) == n_layers and attns[0].shape == (B, n_heads, S, S)

    # Light sanity checks: finite output, softmax rows ~sum to 1, masked keys get ~0 prob.
    assert bool(jnp.all(jnp.isfinite(out)))
    row_sums = jnp.sum(attns[0], axis=-1)
    assert bool(jnp.all(jnp.abs(row_sums - 1.0) < 2e-2))      # approx-recip + bf16 probs
    assert bool(jnp.all(attns[0][1, :, :, 6:] < 1e-4))        # masked key positions

    print("KERNEL_OK")
</pallas_src>

<mosaic_0001>
module attributes {stable_mosaic.version = 11 : i64} {
  func.func @_encoder_stack_kernel(%arg0: i32, %arg1: i32, %arg2: memref<16x32xf32, #tpu.memory_space<vmem>>, %arg3: memref<2x8x8xbf16, #tpu.memory_space<vmem>>, %arg4: memref<1x32x96xbf16, #tpu.memory_space<vmem>>, %arg5: memref<1x32x32xbf16, #tpu.memory_space<vmem>>, %arg6: memref<1x1x32xf32, #tpu.memory_space<vmem>>, %arg7: memref<1x1x32xf32, #tpu.memory_space<vmem>>, %arg8: memref<1x32x64xbf16, #tpu.memory_space<vmem>>, %arg9: memref<1x64x32xbf16, #tpu.memory_space<vmem>>, %arg10: memref<1x1x32xf32, #tpu.memory_space<vmem>>, %arg11: memref<1x1x32xf32, #tpu.memory_space<vmem>>, %arg12: memref<16x32xf32, #tpu.memory_space<vmem>>, %arg13: memref<1x2x2x8x8xbf16, #tpu.memory_space<vmem>>) attributes {dimension_semantics = [#tpu.dimension_semantics<parallel>, #tpu.dimension_semantics<arbitrary>], iteration_bounds = array<i64: 1, 2>, scalar_prefetch = 0 : i64, scratch_operands = 0 : i64, tpu.core_type = #tpu.core_type<tc>, window_params = [{transform_indices = @transform_0, window_bounds = array<i64: 16, 32>}, {transform_indices = @transform_1, window_bounds = array<i64: 2, 8, 8>}, {transform_indices = @transform_2, window_bounds = array<i64: 1, 32, 96>}, {transform_indices = @transform_3, window_bounds = array<i64: 1, 32, 32>}, {transform_indices = @transform_4, window_bounds = array<i64: 1, 1, 32>}, {transform_indices = @transform_5, window_bounds = array<i64: 1, 1, 32>}, {transform_indices = @transform_6, window_bounds = array<i64: 1, 32, 64>}, {transform_indices = @transform_7, window_bounds = array<i64: 1, 64, 32>}, {transform_indices = @transform_8, window_bounds = array<i64: 1, 1, 32>}, {transform_indices = @transform_9, window_bounds = array<i64: 1, 1, 32>}, {transform_indices = @transform_10, window_bounds = array<i64: 16, 32>}, {transform_indices = @transform_11, window_bounds = array<i64: 1, 2, 2, 8, 8>}]} {
    %c0_i32 = arith.constant 0 : i32
    %0 = arith.cmpi eq, %arg1, %c0_i32 : i32
    %1 = arith.extui %0 : i1 to i32
    %c0_i32_0 = arith.constant 0 : i32
    %2 = arith.cmpi ne, %1, %c0_i32_0 : i32
    scf.if %2 {
      %c0_54 = arith.constant 0 : index
      %c0_55 = arith.constant 0 : index
      %120 = vector.load %arg2[%c0_54, %c0_55] : memref<16x32xf32, #tpu.memory_space<vmem>>, vector<16x32xf32>
      %c0_56 = arith.constant 0 : index
      %c0_57 = arith.constant 0 : index
      %121 = vector.load %arg12[%c0_56, %c0_57] : memref<16x32xf32, #tpu.memory_space<vmem>>, vector<16x32xf32>
      tpu.vector_store %arg12[%c0_56, %c0_57], %120 {strides = array<i32>} : memref<16x32xf32, #tpu.memory_space<vmem>>, vector<16x32xf32>,
    } else {
    }
    %c0 = arith.constant 0 : index
    %c0_1 = arith.constant 0 : index
    %3 = vector.load %arg12[%c0, %c0_1] : memref<16x32xf32, #tpu.memory_space<vmem>>, vector<16x32xf32>
    %4 = arith.truncf %3 : vector<16x32xf32> to vector<16x32xbf16>
    %c0_2 = arith.constant 0 : index
    %c0_3 = arith.constant 0 : index
    %c0_4 = arith.constant 0 : index
    %5 = vector.load %arg4[%c0_2, %c0_3, %c0_4] : memref<1x32x96xbf16, #tpu.memory_space<vmem>>, vector<1x32x96xbf16>
    %6 = vector.shape_cast %5 : vector<1x32x96xbf16> to vector<32x96xbf16>
    %cst = arith.constant dense<0.000000e+00> : vector<16x96xf32>
    %7 = tpu.matmul %4, %6, %cst {dimension_numbers = #tpu.dot_dimension_numbers<[1], [0], [0], [1], [0, 0, 1, 1], [], []>} : vector<16x32xbf16>, vector<32x96xbf16>, vector<16x96xf32> -> vector<16x96xf32>
    %8 = vector.shape_cast %7 : vector<16x96xf32> to vector<2x8x96xf32>
    %9 = vector.extract_strided_slice %8 {offsets = [0, 0, 0], sizes = [2, 8, 48], strides = [1, 1, 1]} : vector<2x8x96xf32> to vector<2x8x48xf32>
    %10 = vector.extract_strided_slice %8 {offsets = [0, 0, 48], sizes = [2, 8, 48], strides = [1, 1, 1]} : vector<2x8x96xf32> to vector<2x8x48xf32>
    %11 = vector.shape_cast %9 : vector<2x8x48xf32> to vector<2x1x8x48xf32>
    %12 = vector.shape_cast %10 : vector<2x8x48xf32> to vector<2x1x8x48xf32>
    %13 = tpu.concatenate %11, %12 in 1 : vector<2x1x8x48xf32>, vector<2x1x8x48xf32> -> vector<2x2x8x48xf32>
    %14 = vector.shape_cast %13 : vector<2x2x8x48xf32> to vector<4x8x48xf32>
    %15 = vector.extract_strided_slice %14 {offsets = [0, 0, 0], sizes = [4, 8, 16], strides = [1, 1, 1]} : vector<4x8x48xf32> to vector<4x8x16xf32>
    %16 = arith.truncf %15 : vector<4x8x16xf32> to vector<4x8x16xbf16>
    %17 = vector.extract_strided_slice %14 {offsets = [0, 0, 16], sizes = [4, 8, 16], strides = [1, 1, 1]} : vector<4x8x48xf32> to vector<4x8x16xf32>
    %18 = arith.truncf %17 : vector<4x8x16xf32> to vector<4x8x16xbf16>
    %19 = vector.extract_strided_slice %14 {offsets = [0, 0, 32], sizes = [4, 8, 16], strides = [1, 1, 1]} : vector<4x8x48xf32> to vector<4x8x16xf32>
    %20 = arith.truncf %19 : vector<4x8x16xf32> to vector<4x8x16xbf16>
    "tpu.trace_start"() <{level = 10 : i32, message = "gqd,gkd->gqk"}> : () -> ()
    %cst_5 = arith.constant dense<0.000000e+00> : vector<4x8x8xf32>
    %21 = tpu.matmul %16, %18, %cst_5 {dimension_numbers = #tpu.dot_dimension_numbers<[2], [2], [1], [1], [0, 0, 0, 1, 1, 1], [0], [0]>} : vector<4x8x16xbf16>, vector<4x8x16xbf16>, vector<4x8x8xf32> -> vector<4x8x8xf32>
    "tpu.trace_stop"() : () -> ()
    %22 = vector.shape_cast %21 : vector<4x8x8xf32> to vector<2x2x8x8xf32>
    %c0_6 = arith.constant 0 : index
    %c0_7 = arith.constant 0 : index
    %c0_8 = arith.constant 0 : index
    %23 = vector.load %arg3[%c0_6, %c0_7, %c0_8] : memref<2x8x8xbf16, #tpu.memory_space<vmem>>, vector<2x8x8xbf16>
    %24 = vector.shape_cast %23 : vector<2x8x8xbf16> to vector<2x1x8x8xbf16>
    %25 = arith.extf %24 : vector<2x1x8x8xbf16> to vector<2x1x8x8xf32>
    %26 = vector.broadcast %25 : vector<2x1x8x8xf32> to vector<2x2x8x8xf32>
    %27 = arith.addf %22, %26 : vector<2x2x8x8xf32>
    %cst_9 = arith.constant dense<0xFF800000> : vector<2x2x8xf32>
    %28 = vector.multi_reduction <maximumf>, %27, %cst_9 [3] : vector<2x2x8x8xf32> to vector<2x2x8xf32>
    %29 = vector.shape_cast %28 : vector<2x2x8xf32> to vector<2x2x8x1xf32>
    %30 = vector.broadcast %29 : vector<2x2x8x1xf32> to vector<2x2x8x8xf32>
    %31 = arith.subf %27, %30 : vector<2x2x8x8xf32>
    %32 = math.exp %31 : vector<2x2x8x8xf32>
    %cst_10 = arith.constant dense<0.000000e+00> : vector<2x2x8xf32>
    %33 = vector.multi_reduction <add>, %32, %cst_10 [3] : vector<2x2x8x8xf32> to vector<2x2x8xf32>
    %34 = vector.shape_cast %33 : vector<2x2x8xf32> to vector<2x2x8x1xf32>
    %35 = tpu.reciprocal %34 {approx = true} : vector<2x2x8x1xf32> -> vector<2x2x8x1xf32>
    %36 = vector.broadcast %35 : vector<2x2x8x1xf32> to vector<2x2x8x8xf32>
    %37 = arith.mulf %32, %36 : vector<2x2x8x8xf32>
    %38 = arith.truncf %37 : vector<2x2x8x8xf32> to vector<2x2x8x8xbf16>
    %c0_11 = arith.constant 0 : index
    %c0_12 = arith.constant 0 : index
    %c0_13 = arith.constant 0 : index
    %c0_14 = arith.constant 0 : index
    %c0_15 = arith.constant 0 : index
    %39 = vector.load %arg13[%c0_11, %c0_12, %c0_13, %c0_14, %c0_15] : memref<1x2x2x8x8xbf16, #tpu.memory_space<vmem>>, vector<1x2x2x8x8xbf16>
    %40 = vector.shape_cast %39 : vector<1x2x2x8x8xbf16> to vector<2x2x8x8xbf16>
    %41 = vector.shape_cast %38 : vector<2x2x8x8xbf16> to vector<1x2x2x8x8xbf16>
    tpu.vector_store %arg13[%c0_11, %c0_12, %c0_13, %c0_14, %c0_15], %41 {strides = array<i32>} : memref<1x2x2x8x8xbf16, #tpu.memory_space<vmem>>, vector<1x2x2x8x8xbf16>,
    %42 = vector.shape_cast %38 : vector<2x2x8x8xbf16> to vector<4x8x8xbf16>
    "tpu.trace_start"() <{level = 10 : i32, message = "gqk,gkd->gqd"}> : () -> ()
    %cst_16 = arith.constant dense<0.000000e+00> : vector<4x8x16xf32>
    %43 = tpu.matmul %42, %20, %cst_16 {dimension_numbers = #tpu.dot_dimension_numbers<[2], [1], [1], [2], [0, 0, 0, 1, 1, 2], [0], [0]>} : vector<4x8x8xbf16>, vector<4x8x16xbf16>, vector<4x8x16xf32> -> vector<4x8x16xf32>
    "tpu.trace_stop"() : () -> ()
    %44 = vector.shape_cast %43 : vector<4x8x16xf32> to vector<2x2x8x16xf32>
    %45 = vector.extract_strided_slice %44 {offsets = [0, 0, 0, 0], sizes = [2, 1, 8, 16], strides = [1, 1, 1, 1]} : vector<2x2x8x16xf32> to vector<2x1x8x16xf32>
    %46 = vector.shape_cast %45 : vector<2x1x8x16xf32> to vector<2x8x16xf32>
    %47 = vector.extract_strided_slice %44 {offsets = [0, 1, 0, 0], sizes = [2, 1, 8, 16], strides = [1, 1, 1, 1]} : vector<2x2x8x16xf32> to vector<2x1x8x16xf32>
    %48 = vector.shape_cast %47 : vector<2x1x8x16xf32> to vector<2x8x16xf32>
    %49 = tpu.concatenate %46, %48 in 2 : vector<2x8x16xf32>, vector<2x8x16xf32> -> vector<2x8x32xf32>
    %50 = vector.shape_cast %49 : vector<2x8x32xf32> to vector<16x32xf32>
    %51 = arith.truncf %50 : vector<16x32xf32> to vector<16x32xbf16>
    %c0_17 = arith.constant 0 : index
    %c0_18 = arith.constant 0 : index
    %c0_19 = arith.constant 0 : index
    %52 = vector.load %arg5[%c0_17, %c0_18, %c0_19] : memref<1x32x32xbf16, #tpu.memory_space<vmem>>, vector<1x32x32xbf16>
    %53 = vector.shape_cast %52 : vector<1x32x32xbf16> to vector<32x32xbf16>
    %cst_20 = arith.constant dense<0.000000e+00> : vector<16x32xf32>
    %54 = tpu.matmul %51, %53, %cst_20 {dimension_numbers = #tpu.dot_dimension_numbers<[1], [0], [0], [1], [0, 0, 1, 1], [], []>} : vector<16x32xbf16>, vector<32x32xbf16>, vector<16x32xf32> -> vector<16x32xf32>
    %55 = arith.addf %54, %3 : vector<16x32xf32>
    %cst_21 = arith.constant dense<0.000000e+00> : vector<16xf32>
    %56 = vector.multi_reduction <add>, %55, %cst_21 [1] : vector<16x32xf32> to vector<16xf32>
    %57 = vector.shape_cast %56 : vector<16xf32> to vector<16x1xf32>
    %cst_22 = arith.constant 3.200000e+01 : f32
    %58 = vector.broadcast %cst_22 : f32 to vector<16x1xf32>
    %59 = arith.divf %57, %58 : vector<16x1xf32>
    %60 = vector.broadcast %59 : vector<16x1xf32> to vector<16x32xf32>
    %61 = arith.subf %55, %60 : vector<16x32xf32>
    %62 = arith.mulf %61, %61 : vector<16x32xf32>
    %cst_23 = arith.constant dense<0.000000e+00> : vector<16xf32>
    %63 = vector.multi_reduction <add>, %62, %cst_23 [1] : vector<16x32xf32> to vector<16xf32>
    %64 = vector.shape_cast %63 : vector<16xf32> to vector<16x1xf32>
    %cst_24 = arith.constant 3.200000e+01 : f32
    %65 = vector.broadcast %cst_24 : f32 to vector<16x1xf32>
    %66 = arith.divf %64, %65 : vector<16x1xf32>
    %67 = vector.broadcast %59 : vector<16x1xf32> to vector<16x32xf32>
    %68 = arith.subf %55, %67 : vector<16x32xf32>
    %cst_25 = arith.constant 9.99999974E-6 : f32
    %69 = vector.broadcast %cst_25 : f32 to vector<16x1xf32>
    %70 = arith.addf %66, %69 : vector<16x1xf32>
    %71 = math.rsqrt %70 : vector<16x1xf32>
    %72 = vector.broadcast %71 : vector<16x1xf32> to vector<16x32xf32>
    %73 = arith.mulf %68, %72 : vector<16x32xf32>
    %c0_26 = arith.constant 0 : index
    %c0_27 = arith.constant 0 : index
    %c0_28 = arith.constant 0 : index
    %74 = vector.load %arg6[%c0_26, %c0_27, %c0_28] : memref<1x1x32xf32, #tpu.memory_space<vmem>>, vector<1x1x32xf32>
    %75 = vector.shape_cast %74 : vector<1x1x32xf32> to vector<1x32xf32>
    %76 = vector.broadcast %75 : vector<1x32xf32> to vector<16x32xf32>
    %77 = arith.mulf %73, %76 : vector<16x32xf32>
    %c0_29 = arith.constant 0 : index
    %c0_30 = arith.constant 0 : index
    %c0_31 = arith.constant 0 : index
    %78 = vector.load %arg7[%c0_29, %c0_30, %c0_31] : memref<1x1x32xf32, #tpu.memory_space<vmem>>, vector<1x1x32xf32>
    %79 = vector.shape_cast %78 : vector<1x1x32xf32> to vector<1x32xf32>
    %80 = vector.broadcast %79 : vector<1x32xf32> to vector<16x32xf32>
    %81 = arith.addf %77, %80 : vector<16x32xf32>
    %82 = arith.truncf %81 : vector<16x32xf32> to vector<16x32xbf16>
    %c0_32 = arith.constant 0 : index
    %c0_33 = arith.constant 0 : index
    %c0_34 = arith.constant 0 : index
    %83 = vector.load %arg8[%c0_32, %c0_33, %c0_34] : memref<1x32x64xbf16, #tpu.memory_space<vmem>>, vector<1x32x64xbf16>
    %84 = vector.shape_cast %83 : vector<1x32x64xbf16> to vector<32x64xbf16>
    %cst_35 = arith.constant dense<0.000000e+00> : vector<16x64xf32>
    %85 = tpu.matmul %82, %84, %cst_35 {dimension_numbers = #tpu.dot_dimension_numbers<[1], [0], [0], [1], [0, 0, 1, 1], [], []>} : vector<16x32xbf16>, vector<32x64xbf16>, vector<16x64xf32> -> vector<16x64xf32>
    %cst_36 = arith.constant 0.000000e+00 : f32
    %86 = vector.broadcast %cst_36 : f32 to vector<16x64xf32>
    %87 = arith.maximumf %85, %86 : vector<16x64xf32>
    %88 = arith.truncf %87 : vector<16x64xf32> to vector<16x64xbf16>
    %c0_37 = arith.constant 0 : index
    %c0_38 = arith.constant 0 : index
    %c0_39 = arith.constant 0 : index
    %89 = vector.load %arg9[%c0_37, %c0_38, %c0_39] : memref<1x64x32xbf16, #tpu.memory_space<vmem>>, vector<1x64x32xbf16>
    %90 = vector.shape_cast %89 : vector<1x64x32xbf16> to vector<64x32xbf16>
    %cst_40 = arith.constant dense<0.000000e+00> : vector<16x32xf32>
    %91 = tpu.matmul %88, %90, %cst_40 {dimension_numbers = #tpu.dot_dimension_numbers<[1], [0], [0], [1], [0, 0, 1, 1], [], []>} : vector<16x64xbf16>, vector<64x32xbf16>, vector<16x32xf32> -> vector<16x32xf32>
    %92 = arith.addf %91, %81 : vector<16x32xf32>
    %cst_41 = arith.constant dense<0.000000e+00> : vector<16xf32>
    %93 = vector.multi_reduction <add>, %92, %cst_41 [1] : vector<16x32xf32> to vector<16xf32>
    %94 = vector.shape_cast %93 : vector<16xf32> to vector<16x1xf32>
    %cst_42 = arith.constant 3.200000e+01 : f32
    %95 = vector.broadcast %cst_42 : f32 to vector<16x1xf32>
    %96 = arith.divf %94, %95 : vector<16x1xf32>
    %97 = vector.broadcast %96 : vector<16x1xf32> to vector<16x32xf32>
    %98 = arith.subf %92, %97 : vector<16x32xf32>
    %99 = arith.mulf %98, %98 : vector<16x32xf32>
    %cst_43 = arith.constant dense<0.000000e+00> : vector<16xf32>
    %100 = vector.multi_reduction <add>, %99, %cst_43 [1] : vector<16x32xf32> to vector<16xf32>
    %101 = vector.shape_cast %100 : vector<16xf32> to vector<16x1xf32>
    %cst_44 = arith.constant 3.200000e+01 : f32
    %102 = vector.broadcast %cst_44 : f32 to vector<16x1xf32>
    %103 = arith.divf %101, %102 : vector<16x1xf32>
    %104 = vector.broadcast %96 : vector<16x1xf32> to vector<16x32xf32>
    %105 = arith.subf %92, %104 : vector<16x32xf32>
    %cst_45 = arith.constant 9.99999974E-6 : f32
    %106 = vector.broadcast %cst_45 : f32 to vector<16x1xf32>
    %107 = arith.addf %103, %106 : vector<16x1xf32>
    %108 = math.rsqrt %107 : vector<16x1xf32>
    %109 = vector.broadcast %108 : vector<16x1xf32> to vector<16x32xf32>
    %110 = arith.mulf %105, %109 : vector<16x32xf32>
    %c0_46 = arith.constant 0 : index
    %c0_47 = arith.constant 0 : index
    %c0_48 = arith.constant 0 : index
    %111 = vector.load %arg10[%c0_46, %c0_47, %c0_48] : memref<1x1x32xf32, #tpu.memory_space<vmem>>, vector<1x1x32xf32>
    %112 = vector.shape_cast %111 : vector<1x1x32xf32> to vector<1x32xf32>
    %113 = vector.broadcast %112 : vector<1x32xf32> to vector<16x32xf32>
    %114 = arith.mulf %110, %113 : vector<16x32xf32>
    %c0_49 = arith.constant 0 : index
    %c0_50 = arith.constant 0 : index
    %c0_51 = arith.constant 0 : index
    %115 = vector.load %arg11[%c0_49, %c0_50, %c0_51] : memref<1x1x32xf32, #tpu.memory_space<vmem>>, vector<1x1x32xf32>
    %116 = vector.shape_cast %115 : vector<1x1x32xf32> to vector<1x32xf32>
    %117 = vector.broadcast %116 : vector<1x32xf32> to vector<16x32xf32>
    %118 = arith.addf %114, %117 : vector<16x32xf32>
    %c0_52 = arith.constant 0 : index
    %c0_53 = arith.constant 0 : index
    %119 = vector.load %arg12[%c0_52, %c0_53] : memref<16x32xf32, #tpu.memory_space<vmem>>, vector<16x32xf32>
    tpu.vector_store %arg12[%c0_52, %c0_53], %118 {strides = array<i32>} : memref<16x32xf32, #tpu.memory_space<vmem>>, vector<16x32xf32>,
    return
  }
  func.func @transform_0(%arg0: i32, %arg1: i32) -> (i32, i32) {
    %c0_i32 = arith.constant 0 : i32
    %c0_i32_0 = arith.constant 0 : i32
    return %arg0, %c0_i32 : i32, i32
  }
  func.func @transform_1(%arg0: i32, %arg1: i32) -> (i32, i32, i32) {
    %c0_i32 = arith.constant 0 : i32
    %c0_i32_0 = arith.constant 0 : i32
    %c0_i32_1 = arith.constant 0 : i32
    return %arg0, %c0_i32, %c0_i32_0 : i32, i32, i32
  }
  func.func @transform_2(%arg0: i32, %arg1: i32) -> (i32, i32, i32) {
    %c0_i32 = arith.constant 0 : i32
    %c0_i32_0 = arith.constant 0 : i32
    %c0_i32_1 = arith.constant 0 : i32
    return %arg1, %c0_i32, %c0_i32_0 : i32, i32, i32
  }
  func.func @transform_3(%arg0: i32, %arg1: i32) -> (i32, i32, i32) {
    %c0_i32 = arith.constant 0 : i32
    %c0_i32_0 = arith.constant 0 : i32
    %c0_i32_1 = arith.constant 0 : i32
    return %arg1, %c0_i32, %c0_i32_0 : i32, i32, i32
  }
  func.func @transform_4(%arg0: i32, %arg1: i32) -> (i32, i32, i32) {
    %c0_i32 = arith.constant 0 : i32
    %c0_i32_0 = arith.constant 0 : i32
    %c0_i32_1 = arith.constant 0 : i32
    return %arg1, %c0_i32, %c0_i32_0 : i32, i32, i32
  }
  func.func @transform_5(%arg0: i32, %arg1: i32) -> (i32, i32, i32) {
    %c0_i32 = arith.constant 0 : i32
    %c0_i32_0 = arith.constant 0 : i32
    %c0_i32_1 = arith.constant 0 : i32
    return %arg1, %c0_i32, %c0_i32_0 : i32, i32, i32
  }
  func.func @transform_6(%arg0: i32, %arg1: i32) -> (i32, i32, i32) {
    %c0_i32 = arith.constant 0 : i32
    %c0_i32_0 = arith.constant 0 : i32
    %c0_i32_1 = arith.constant 0 : i32
    return %arg1, %c0_i32, %c0_i32_0 : i32, i32, i32
  }
  func.func @transform_7(%arg0: i32, %arg1: i32) -> (i32, i32, i32) {
    %c0_i32 = arith.constant 0 : i32
    %c0_i32_0 = arith.constant 0 : i32
    %c0_i32_1 = arith.constant 0 : i32
    return %arg1, %c0_i32, %c0_i32_0 : i32, i32, i32
  }
  func.func @transform_8(%arg0: i32, %arg1: i32) -> (i32, i32, i32) {
    %c0_i32 = arith.constant 0 : i32
    %c0_i32_0 = arith.constant 0 : i32
    %c0_i32_1 = arith.constant 0 : i32
    return %arg1, %c0_i32, %c0_i32_0 : i32, i32, i32
  }
  func.func @transform_9(%arg0: i32, %arg1: i32) -> (i32, i32, i32) {
    %c0_i32 = arith.constant 0 : i32
    %c0_i32_0 = arith.constant 0 : i32
    %c0_i32_1 = arith.constant 0 : i32
    return %arg1, %c0_i32, %c0_i32_0 : i32, i32, i32
  }
  func.func @transform_10(%arg0: i32, %arg1: i32) -> (i32, i32) {
    %c0_i32 = arith.constant 0 : i32
    %c0_i32_0 = arith.constant 0 : i32
    return %arg0, %c0_i32 : i32, i32
  }
  func.func @transform_11(%arg0: i32, %arg1: i32) -> (i32, i32, i32, i32, i32) {
    %c0_i32 = arith.constant 0 : i32
    %c0_i32_0 = arith.constant 0 : i32
    %c0_i32_1 = arith.constant 0 : i32
    %c0_i32_2 = arith.constant 0 : i32
    return %arg1, %arg0, %c0_i32, %c0_i32_0, %c0_i32_1 : i32, i32, i32, i32, i32
  }
}

</mosaic_0001>

<bundles_post_ra>
// kernel: tpu_custom_call.1
= control target key start
LH: loop header
LB: loop body
LE: loop exit
PB: predicated region body
PF: predicated region fallthrough
CT: control target
= control target key end

     0   :  { %s2598_s0 = inlined_call_operand.hbm [shape: f32[16,32], index: 0, kind: input, shape index: {}]   ;;  %s2599_s1 = inlined_call_operand.hbm [shape: bf16[2,8,8], index: 1, kind: input, shape index: {}]   ;;  %s2600_s2 = inlined_call_operand.vmem [shape: bf16[2,32,96], index: 2, kind: input, shape index: {}]   ;;  %s2601_s3 = inlined_call_operand.vmem [shape: bf16[2,32,32], index: 3, kind: input, shape index: {}]   ;;  %s2602_s4 = inlined_call_operand.vmem [shape: f32[2,1,32], index: 4, kind: input, shape index: {}]   ;;  %s2603_s5 = inlined_call_operand.vmem [shape: f32[2,1,32], index: 5, kind: input, shape index: {}]   ;;  %s2604_s6 = inlined_call_operand.vmem [shape: bf16[2,32,64], index: 6, kind: input, shape index: {}]   ;;  %s2605_s7 = inlined_call_operand.vmem [shape: bf16[2,64,32], index: 7, kind: input, shape index: {}]   ;;  %s2606_s8 = inlined_call_operand.vmem [shape: f32[2,1,32], index: 8, kind: input, shape index: {}]   ;;  %s2607_s9 = inlined_call_operand.vmem [shape: f32[2,1,32], index: 9, kind: input, shape index: {}]   ;;  %s2608_s10 = inlined_call_operand.hbm [shape: f32[16,32], index: 10, kind: output, shape index: {0}]   ;;  %s2609_s11 = inlined_call_operand.hbm [shape: bf16[2,2,2,8,8], index: 11, kind: output, shape index: {1}]  }
   0x1   :  { %2625 = sst [smem:[#allocation21_spill]] %s2598_s0 }
   0x2   :  { %2626 = sst [smem:[#allocation22_spill]] %s2599_s1 }
   0x3   :  { %2627 = sst [smem:[#allocation23_spill]] %s2600_s2 }
   0x4   :  { %2628 = sst [smem:[#allocation24_spill]] %s2601_s3 }
   0x5   :  { %2629 = sst [smem:[#allocation25_spill]] %s2608_s10 }
   0x6   :  { %17 = vsyncpa [#allocation3], 0 }
   0x7   :  { %18 = vsyncpa [#allocation6], 0 }
   0x8   :  { %19 = vsyncpa [#allocation4], 0 }
   0x9   :  { %20 = vsyncpa [#allocation9], 0 }
   0xa   :  { %22 = vsyncpa [#allocation9 + $0x1], 0  ;;  %s2192_s17 = smov 0   ;;  %s2194_s18 = smov 0  }
   0xb   :  { %s2196_s19 = smov 0   ;;  %s2198_s20 = smov 0  }
   0xc   :  { %s2200_s21 = smov 0   ;;  %s2202_s22 = smov 0  }
   0xd LB: > { %2630 = sst [smem:[#allocation14_spill]] %s2092_s17  ;;  %s1629_s23 = sadd.s32 4294967295, %s2112_s22   ;;  %s2112_s22 = sphi %s2202_s22, %s28_s22   ;;  %s2108_s21 = sphi %s2200_s21, %s2661_s21   ;;  %s2104_s20 = sphi %s2198_s20, %s2660_s20   ;;  %s2100_s19 = sphi %s2196_s19, %s2659_s19   ;;  %s2096_s18 = sphi %s2194_s18, %s2663_s18   ;;  %s2092_s17 = sphi %s2192_s17, %s2662_s17  }
   0xe   : > { %2631 = sst [smem:[#allocation15_spill]] %s2100_s19  ;;  %s1630_s24 = sadd.s32 4294967294, %s2112_s22  }
   0xf   : > { %2632 = sst [smem:[#allocation16_spill]] %s2108_s21  ;;  %s37_s25 = sadd.s32 1, %s2108_s21 }
  0x10   : > { %2633 = sst [smem:[#allocation17_spill]] %s2112_s22  ;;  %s335_s26 = sadd.s32 1, %s2100_s19 }
  0x11   : > { %p38_p0 = scmp.ge.s32.totalorder %s37_s25, 2  ;;  %p345_p1 = scmp.ne.s32.totalorder %s2100_s19, %s2096_s18 }
  0x12   : > { %p2228_p2 = scmp.eq.s32.totalorder %s1629_s23, 1  ;;  %p351_p3 = scmp.ne.s32.totalorder %s2096_s18, %s2092_s17 }
  0x13   : > { %s2665_s25 = smov (%p38_p0, %s37_s25), 0  ;;  %p352_p5 = scmp.eq.s32.totalorder %s1630_s24, 1 }
  0x14   : > { %s2634_s27 = scalar_select %p2228_p2, 1, 0 }
  0x15   : > { %2635 = sst [smem:[#allocation18_spill]] %s2665_s25  ;;  %p2238_p4 = por %p2228_p2, %p345_p1 }
  0x16   : > { %s330_s29 = ssub.s32 %s2108_s21, %s2665_s25  ;;  %p1631_p6 = scmp.ge.s32.totalorder %s2112_s22, 1 }
  0x17   : > { %s2636_s28 = scalar_select %p2238_p4, 1, 0 }
  0x18   : > { %p333_p7 = scmp.eq.s32.totalorder %s330_s29, 0  ;;  %p2245_p8 = por %p352_p5, %p351_p3 }
  0x19   : > { %p359_p9 = scmp.lt.s32.totalorder %s2112_s22, 3  ;;  %p2257_p11 = scmp.eq.s32.totalorder %s1629_s23, 0 }
  0x1a   : > { %s2637_s30 = scalar_select %p2245_p8, 1, 0 }
  0x1b   : > { %s2251_s12 = scalar_select %p333_p7, %s2100_s19, %s335_s26  }
  0x1c   : > { %2638 = sst [smem:[#allocation19_spill]] %s2637_s30  ;;  %p2253_p10 = pnand %p1631_p6, %p359_p9 }
  0x1d   : > { %2639 = sst [smem:[#allocation20_spill]] %s2251_s12  ;;  %s2114_s15 = smov [#allocation2]  }
  0x1e   : > { %s2640_s13 = scalar_select %p2253_p10, 1, 0 }
  0x1f   : > { %s2641_s14 = scalar_select %p2257_p11, 1, 0 }
  0x20   : > { %p1818_p12 = pneg %p2253_p10  ;;  %s374_s16 = sshll.u32 %s2114_s15, 4  ;;  %s375_s16 = int_to_ptr.vmem [resolvable:$true] %s374_s16 }
  0x21   : > { %s2115_s26 = smov [#allocation5]   ;;  %s2643_s0 = sld [smem:[#allocation21_spill]] }
  0x22   : > { %p2265_p13 = pnand %p2257_p11, %p1818_p12  ;;  %s390_s29 = sshll.u32 %s2115_s26, 4  ;;  %s2269_s29 = int_to_ptr.vmem [resolvable:$true] %s390_s29 }
  0x24   : > { %p1942_p1 = pneg %p2265_p13 }
  0x27   : > { %s1940_s21 = scalar_lea.hbm %s2643_s0, 256 }
  0x28   : > { %p1941_p0 = scmp.ne.s32.totalorder %s2643_s0, %s1940_s21  ;;  %p1947_p6 = scmp.lt.u32.totalorder %s1940_s21, %s2643_s0 }
  0x2a   : > { %p1943_p3 = pnand %p1942_p1, %p1941_p0 }
  0x2c   : > { %p1944_p5 = pneg %p1943_p3 }
  0x2e   : > { %p1949_p7 = pnand %p1947_p6, %p1944_p5 }
  0x30   : > { %1952 = shalt.err (!%p1949_p7)
}
  0x31   : > { %s1953_s26 = scalar_lea.vmem %s375_s16, 256  ;;  %p1961_p2 = scmp.lt.s32.totalorder %s375_s16, %s375_s16 }
  0x32   : > { %p1954_p9 = scmp.ne.s32.totalorder %s375_s16, %s1953_s26  ;;  %p1962_p4 = scmp.lt.s32.totalorder %s1953_s26, %s1953_s26 }
  0x34   : > { %p1956_p12 = pnand %p1954_p9, %p1942_p1  ;;  %p1963_p11 = por %p1962_p4, %p1961_p2 }
  0x36   : > { %p1957_p8 = pneg %p1956_p12 }
  0x38   : > { %p1964_p10 = pnand %p1963_p11, %p1957_p8 }
  0x3a   : > { %1967 = shalt.err (!%p1964_p10)
}
  0x3b   : > { %s2116_s19 = smov 128   ;;  %s2117_s25 = smov 8  }
  0x3c   : > { %1821 = dma.hbm_to_vmem [thread:$0]  (!%p2265_p13), %s2643_s0, 256, %s375_s16, [#allocation3], %s2116_s19, %s2116_s19, %s2117_s25  }
  0x3d   : > { %s2644_s1 = sld [smem:[#allocation22_spill]] }
  0x43   : > { %s1968_s15 = scalar_lea.hbm %s2644_s1, 128 }
  0x44   : > { %p1969_p0 = scmp.ne.s32.totalorder %s2644_s1, %s1968_s15  ;;  %p1975_p8 = scmp.lt.u32.totalorder %s1968_s15, %s2644_s1 }
  0x46   : > { %p1971_p2 = pnand %p1969_p0, %p1942_p1 }
  0x48   : > { %p1972_p4 = pneg %p1971_p2 }
  0x4a   : > { %p1977_p10 = pnand %p1975_p8, %p1972_p4 }
  0x4c   : > { %1980 = shalt.err (!%p1977_p10)
}
  0x4d   : > { %s1981_s16 = scalar_lea.vmem %s2269_s29, 128  ;;  %p1989_p6 = scmp.lt.s32.totalorder %s2269_s29, %s2269_s29 }
  0x4e   : > { %p1982_p11 = scmp.ne.s32.totalorder %s2269_s29, %s1981_s16  ;;  %p1990_p7 = scmp.lt.s32.totalorder %s1981_s16, %s1981_s16 }
  0x50   : > { %p1984_p3 = pnand %p1982_p11, %p1942_p1  ;;  %p1991_p9 = por %p1990_p7, %p1989_p6 }
  0x52   : > { %p1985_p5 = pneg %p1984_p3 }
  0x54   : > { %p1992_p12 = pnand %p1991_p9, %p1985_p5 }
  0x56   : > { %1995 = shalt.err (!%p1992_p12)
}
  0x57   : > { %s2118_s10 = smov 64   ;;  %s2119_s17 = smov 4  }
  0x58   : > { %1824 = dma.hbm_to_vmem [thread:$0]  (!%p2265_p13), %s2644_s1, 128, %s2269_s29, [#allocation6], %s2118_s10, %s2118_s10, %s2119_s17  }
  0x59   : > { %p2645_p0 = scmp.ne.s32.totalorder %s2640_s13, 0 }
  0x5a   : > { %p2646_p1 = scmp.ne.s32.totalorder (!%p2645_p0), %s2641_s14, 0 }
  0x5b   : > { %462 = sbr.rel (%p2645_p0) target bundleno = 2751 (0xabf), region = 60 }
  0x62   : > { %2075 = dma.done.wait (%p2646_p1), [#allocation3], 256  }
  0x63   : > { %2077 = vsyncadd (%p2646_p1), [#allocation3], 4294967040 }
  0x64   : > { %2079 = dma.done.wait (%p2646_p1), [#allocation6], 128  }
  0x65   : > { %2081 = vsyncadd (%p2646_p1), [#allocation6], 4294967168  ;;  %s2624_s24 = sand.u32 1, %s2096_s18   ;;  %p535_p13 = scmp.lt.s32.totalorder %s2104_s20, 1 }
  0x66   : > { %s1638_s13 = sshll.u32 %s2624_s24, 4  ;;  %s2647_s2 = sld [smem:[#allocation23_spill]] }
  0x67   : > { %s2333_s29 = scalar_select %p535_p13, %s2104_s20, 1 }
  0x68   : > { %s2648_s3 = sld [smem:[#allocation24_spill]]  ;;  %s2371_s22 = scalar_lea.vmem [#allocation8], %s1638_s13 }
  0x69   : > { %s1681_s25 = sshll.u32 %s2333_s29, 4  ;;  %s550_s19 = scalar_lea.vmem %s2603_s5, %s2333_s29 }
  0x6a   : > { %s2355_s1 = scalar_lea.vmem %s2604_s6, %s1681_s25  ;;  %s1684_s21 = sshll.u32 %s2333_s29, 5 }
  0x6b   : > { %s563_s12 = scalar_lea.vmem %s2606_s8, %s2333_s29  ;;  %s2365_s26 = scalar_lea.vmem %s2605_s7, %s1684_s21 }
  0x6c   : > { %s539_s15 = scalar_lea.vmem %s2647_s2, %s1681_s25  ;;  %s566_s17 = scalar_lea.vmem %s2607_s9, %s2333_s29 }
  0x6d   : > { %p1647_p2 = scmp.ne.s32.totalorder %s2104_s20, 0 }
  0x6e   : > { %s2346_s10 = scalar_lea.vmem %s2648_s3, %s1681_s25  ;;  %v574_v0 = vld [vmem:[#allocation2] sm:$0xff] (!%p1647_p2)  ;;  %vm576_vm0 = vcmask (!%p1647_p2), 261120   ;;  %v575_v1 = vld [vmem:[#allocation2 + $0x8] sm:$0xff] (!%p1647_p2) }
  0x6f   : > { %573 = sbr.rel (%p1647_p2) target bundleno = 118 (0x76), region = 72  ;;  %577 = vst.msk [vmem:[#allocation7] sm:$0xff] (!%p1647_p2), %vm576_vm0, %v574_v0  ;;  %578 = vst.msk [vmem:[#allocation7 + $0x8] sm:$0xff] (!%p1647_p2), %vm576_vm0, %v575_v1 }
  0x76 PF: > { %v1906_v2 = vld [vmem:[%s539_s15] sm:$0xff]   ;;  %v2120_v3 = vmov 0.0   ;;  %v1907_v4 = vld [vmem:[%s539_s15 + $0x8] sm:$0xff]   ;;  %vm2121_vm1 = vmmov 0   ;;  %v2378_v5 = vld [vmem:[#allocation7] sm:$0xff]  ;;  %vm598_vm2 = vcmask 261120   ;;  %s2649_s25 = scalar_lea.vmem %s2602_s4, %s2333_s29 }
  0x77   : > { %1720 = vmatprep.subr.bf16.mxu0 %v2120_v3  ;;  %1728 = vmatprep.subr.bf16.mxu1 %v2120_v3  ;;  %v2380_v6 = vld [vmem:[#allocation7 + $0x8] sm:$0xff]  ;;  %s2122_s0 = smov 80   ;;  %s2123_s2 = smov 112   ;;  %vm658_vm3 = vcmask 130048   ;;  %v1687_v30 = vld [vmem:[#allocation5] sm:$0xff]   ;;  %vm860_vm4 = vcmask 64512  }
  0x78   : > { %1721 = vmatpush3.bf16.msra.mxu0 %v1906_v2  ;;  %1724 = vmatprep.mubr.msk.bf16.mxu0 %vm2121_vm1, %v2120_v3  ;;  %v581_v7 = vpack.c.bf16 %v2380_v6, %v2378_v5  ;;  %v1688_v31 = vunpack.c.l.bf16 %v1687_v30  ;;  %v1689_v39 = vunpack.c.h.bf16 %v1687_v30  ;;  %s2124_s3 = smov 96   ;;  %vm919_vm5 = vcmask 1043456   ;;  %s2125_s24 = smov 16  }
  0x79   : > { %1722 = vmatprep.subr.bf16.mxu0 %v2120_v3  ;;  %1730 = vmatprep.mubr.msk.bf16.mxu1 %vm2121_vm1, %v2120_v3  ;;  %vm909_vm6 = vcmask 60416   ;;  %vm1319_vm7 = vcmask 523264   ;;  %s1443_s23 = sshll.u32 %s2371_s22, 4  ;;  %p2651_p8 = scmp.ne.s32.totalorder %s2636_s28, 0  ;;  %s2514_s23 = int_to_ptr.vmem [resolvable:$true] %s1443_s23 }
  0x7c   : > { %1723 = vmatpush3.bf16.msra.mxu0 %v1907_v4 }
  0x7d   : > { %1734 = vmatprep.subr.bf16.mxu0 %v2120_v3 }
  0x7f   : > { %1725 = vmatmul.mubr.msk.bf16.vlgmr.msra.gmra.mrb[0].mxu0 %vm598_vm2, %v581_v7 }
  0x80   : > { %1736 = vmatprep.mubr.msk.bf16.mxu0 %vm2121_vm1, %v2120_v3 }
 0x152   : > { %v636_v8 = vpop.f32.mrb[0].mxu0 }
 0x153   : > { %645 = vrot.lane.b32.xlu0 %v636_v8, %s2122_s0  ;;  %v1726_v9 = vpop.f32.mrb[1].mxu0  ;;  %v2391_v12 = vpack.c.bf16 %v636_v8, %v636_v8 }
 0x154   : > { %v639_v10 = vpop.f32.mrb[2].mxu0 }
 0x155   : > { %v1727_v11 = vpop.f32.mrb[3].mxu0  ;;  %v2400_v18 = vpack.c.bf16 %v639_v10, %v639_v10 }
 0x157   : > { %647 = vrot.lane.b32.xlu0 %v639_v10, %s2122_s0  ;;  %s1996_s0 = scalar_lea.vmem %s2514_s23, 256 }
 0x158   : > { %p1997_p4 = scmp.ne.s32.totalorder %s2514_s23, %s1996_s0 }
 0x15a   : > { %p1998_p10 = pnand %p1997_p4, %p2651_p8 }
 0x15b   : > { %656 = vrot.lane.b32.xlu0 %v2391_v12, %s2123_s2 }
 0x15c   : > { %p1999_p11 = pneg %p1998_p10 }
 0x1c5   : > { %v646_v13 = vpop.permute.xlu0 %645 }
 0x1c6   : > { %v2394_v14 = vpack.c.bf16 %v646_v13, %v646_v13 }
 0x1c8   : > { %706 = vrot.lane.b32.xlu1 %v2394_v14, %s2123_s2 }
 0x1c9   : > { %v648_v15 = vpop.permute.xlu0 %647 }
 0x1ca   : > { %v2397_v16 = vpack.c.bf16 %v648_v15, %v648_v15 }
 0x1cc   : > { %804 = vrot.lane.b32.xlu1 %v2397_v16, %s2123_s2 }
 0x1cd   : > { %v657_v17 = vpop.permute.xlu0 %656 }
 0x1ce   : > { %v663_v19 = vsel %vm658_vm3, %v657_v17, 0 }
 0x1cf   : > { %1729 = vmatpush3.bf16.xpose.msra.mxu1 %v663_v19 }
 0x1d0   : > { %755 = vrot.lane.b32.xlu1 %v2400_v18, %s2123_s2  ;;  %1740 = vmatprep.subr.bf16.mxu1 %v2120_v3 }
 0x1d6   : > { %1731 = vmatmul.mubr.msk.bf16.vlgmr.msra.gmra.mrb[0].mxu1 %vm658_vm3, %v2391_v12 }
 0x1d7   : > { %1742 = vmatprep.mubr.msk.bf16.mxu1 %vm2121_vm1, %v2120_v3 }
 0x23a   : > { %v707_v20 = vpop.permute.xlu1 %706 }
 0x23b   : > { %v712_v21 = vsel %vm658_vm3, %v707_v20, 0 }
 0x23c   : > { %1735 = vmatpush3.bf16.xpose.msra.mxu0 %v712_v21 }
 0x23d   : > { %1746 = vmatprep.subr.bf16.mxu0 %v2120_v3 }
 0x23e   : > { %v805_v22 = vpop.permute.xlu1 %804 }
 0x23f   : > { %v810_v24 = vsel %vm658_vm3, %v805_v22, 0 }
 0x242   : > { %v756_v23 = vpop.permute.xlu1 %755 }
 0x243   : > { %v761_v25 = vsel %vm658_vm3, %v756_v23, 0  ;;  %1737 = vmatmul.mubr.msk.bf16.vlgmr.msra.gmra.mrb[4].mxu0 %vm658_vm3, %v2394_v14 }
 0x244   : > { %1741 = vmatpush3.bf16.xpose.msra.mxu1 %v761_v25  ;;  %1747 = vmatpush3.bf16.xpose.msra.mxu0 %v810_v24 }
 0x245   : > { %1748 = vmatprep.mubr.msk.bf16.mxu0 %vm2121_vm1, %v2120_v3  ;;  %1758 = vmatprep.subr.bf16.mxu0 %v2120_v3 }
 0x246   : > { %1752 = vmatprep.subr.bf16.mxu1 %v2120_v3 }
 0x24b   : > { %1743 = vmatmul.mubr.msk.bf16.vlgmr.msra.gmra.mrb[4].mxu1 %vm658_vm3, %v2400_v18  ;;  %1749 = vmatmul.mubr.msk.bf16.vlgmr.msra.gmra.mrb[8].mxu0 %vm658_vm3, %v2397_v16 }
 0x24c   : > { %1760 = vmatprep.mubr.msk.bf16.mxu0 %vm2121_vm1, %v2120_v3  ;;  %1754 = vmatprep.mubr.msk.bf16.mxu1 %vm2121_vm1, %v2120_v3 }
 0x2a9   : > { %v699_v26 = vpop.f32.mrb[0].mxu1 }
 0x2aa   : > { %v1732_v27 = vpop.f32.mrb[1].mxu1  ;;  %v856_v36 = vadd.f32 %v1688_v31, %v699_v26 }
 0x2ab   : > { %v702_v28 = vpop.f32.mrb[2].mxu1 }
 0x2ac   : > { %v1733_v29 = vpop.f32.mrb[3].mxu1  ;;  %v861_v40 = vsel %vm860_vm4, %v856_v36, -inf }
 0x316   : > { %v748_v32 = vpop.f32.mrb[4].mxu0 }
 0x317   : > { %v857_v33 = vadd.f32 %v1688_v31, %v748_v32  ;;  %v1738_v34 = vpop.f32.mrb[5].mxu0 }
 0x318   : > { %v751_v35 = vpop.f32.mrb[6].mxu0 }
 0x319   : > { %v1739_v37 = vpop.f32.mrb[7].mxu0  ;;  %v864_v38 = vsel %vm860_vm4, %v857_v33, -inf }
 0x31a   : > { %865 = vmax.xlane.f32.xlu0 %v864_v38  ;;  %v1909_v37 = vld [vmem:[%s2346_s10 + $0x8] sm:$0xff]  }
 0x31e   : > { %v797_v41 = vpop.f32.mrb[4].mxu1  ;;  %862 = vmax.xlane.f32.xlu0 %v861_v40  ;;  %v846_v42 = vpop.f32.mrb[8].mxu0 }
 0x31f   : > { %v858_v43 = vadd.f32 %v1689_v39, %v797_v41  ;;  %v859_v44 = vadd.f32 %v1689_v39, %v846_v42  ;;  %v1744_v45 = vpop.f32.mrb[5].mxu1  ;;  %v1750_v46 = vpop.f32.mrb[9].mxu0 }
 0x320   : > { %v800_v47 = vpop.f32.mrb[6].mxu1  ;;  %v849_v48 = vpop.f32.mrb[10].mxu0 }
 0x321   : > { %v1745_v49 = vpop.f32.mrb[7].mxu1  ;;  %v1751_v50 = vpop.f32.mrb[11].mxu0  ;;  %v867_v51 = vsel %vm860_vm4, %v858_v43, -inf  ;;  %v870_v52 = vsel %vm860_vm4, %v859_v44, -inf }
 0x322   : > { %868 = vmax.xlane.f32.xlu0 %v867_v51  ;;  %871 = vmax.xlane.f32.xlu1 %v870_v52 }
 0x3a7   : > { %v866_v53 = vpop.xlane.xlu0 %865 }
 0x3a8   : > { %v874_v54 = vsub.f32 %v857_v33, %v866_v53 }
 0x3aa   : > { %v879_v55 = vmul.f32 1.442695, %v874_v54 }
 0x3ab   : > { %v863_v63 = vpop.xlane.xlu0 %862 }
 0x3ac   : > { %1916 = vpow2.f32 %v879_v55  ;;  %v873_v0 = vsub.f32 %v856_v36, %v863_v63  ;;  %v1908_v36 = vld [vmem:[%s2346_s10] sm:$0xff]   ;;  %s1685_s10 = sshll.u32 %s2104_s20, 8  ;;  %s2126_s20 = smov [#allocation8]  }
 0x3ad   : > { %s2511_s14 = scalar_lea.hbm %s2609_s11, %s1685_s10  ;;  %s2000_s2 = sshll.u32 %s2126_s20, 4  ;;  %s2001_s2 = int_to_ptr.vmem [resolvable:$false] %s2000_s2 }
 0x3ae   : > { %v877_v1 = vmul.f32 1.442695, %v873_v0  ;;  %p2003_p3 = scmp.lt.s32.totalorder %s2514_s23, %s2001_s2 }
 0x3af   : > { %v872_v56 = vpop.xlane.xlu1 %871  ;;  %v869_v2 = vpop.xlane.xlu0 %868 }
 0x3b0   : > { %v876_v57 = vsub.f32 %v859_v44, %v872_v56  ;;  %v875_v4 = vsub.f32 %v858_v43, %v869_v2 }
 0x3b2   : > { %v883_v58 = vmul.f32 1.442695, %v876_v57  ;;  %v881_v7 = vmul.f32 1.442695, %v875_v4 }
 0x3b4   : > { %1918 = vpow2.f32 %v883_v58 }
 0x3b5   : > { %1920 = vpow2.f32 %v877_v1 }
 0x3b6   : > { %v1917_v59 = vpop.eup %1916  ;;  %1922 = vpow2.f32 %v881_v7 }
 0x3b7   : > { %v888_v60 = vsel %vm860_vm4, %v1917_v59, 0.0 }
 0x3b8   : > { %889 = vadd.xlane.f32.xlu1 %v888_v60 }
 0x3be   : > { %v1919_v61 = vpop.eup %1918 }
 0x3bf   : > { %v894_v62 = vsel %vm860_vm4, %v1919_v61, 0.0  ;;  %v1921_v8 = vpop.eup %1920 }
 0x3c0   : > { %895 = vadd.xlane.f32.xlu0 %v894_v62  ;;  %v885_v9 = vsel %vm860_vm4, %v1921_v8, 0.0  ;;  %v1923_v10 = vpop.eup %1922 }
 0x3c1   : > { %v891_v11 = vsel %vm860_vm4, %v1923_v10, 0.0 }
 0x3c9   : > { %963 = vrot.lane.b32.xlu1 %v2394_v14, %s2124_s3 }
 0x3d6   : > { %1059 = vrot.lane.b32.xlu0 %v2397_v16, %s2124_s3 }
 0x3ed   : > { %886 = vadd.xlane.f32.xlu1 %v885_v9 }
 0x3f5   : > { %892 = vadd.xlane.f32.xlu0 %v891_v11 }
 0x3fe   : > { %914 = vrot.lane.b32.xlu1 %v2391_v12, %s2124_s3 }
 0x40b   : > { %1011 = vrot.lane.b32.xlu0 %v2400_v18, %s2124_s3  ;;  %s2002_s3 = scalar_lea.vmem %s2001_s2, 512 }
 0x40c   : > { %p2004_p5 = scmp.lt.s32.totalorder %s2002_s3, %s1996_s0 }
 0x40e   : > { %p2005_p6 = por %p2004_p5, %p2003_p3 }
 0x410   : > { %p2006_p7 = pnand %p2005_p6, %p1999_p11 }
 0x445   : > { %v890_v13 = vpop.xlane.xlu1 %889 }
 0x446   : > { %1924 = vrcp.f32 %v890_v13 }
 0x449   : > { %v964_v14 = vpop.permute.xlu1 %963 }
 0x44a   : > { %v969_v15 = vsel %vm919_vm5, %v964_v14, 0 }
 0x44b   : > { %1759 = vmatpush3.bf16.msra.mxu0 %v969_v15 }
 0x44c   : > { %1770 = vmatprep.subr.bf16.mxu0 %v2120_v3 }
 0x44d   : > { %v896_v16 = vpop.xlane.xlu0 %895 }
 0x44e   : > { %1926 = vrcp.f32 %v896_v16 }
 0x450   : > { %v1925_v17 = vpop.eup %1924 }
 0x451   : > { %v902_v19 = vmul.f32 %v1925_v17, %v1917_v59  ;;  %v1060_v20 = vpop.permute.xlu0 %1059  ;;  %v1910_v17 = vld [vmem:[%s2355_s1] sm:$0xff]  }
 0x452   : > { %v1065_v18 = vsel %vm919_vm5, %v1060_v20, 0  ;;  %v1912_v20 = vld [vmem:[%s2365_s26] sm:$0xff]  }
 0x453   : > { %v906_v12 = vpack.c.bf16 %v902_v19, %v902_v19  ;;  %v1911_v19 = vld [vmem:[%s2355_s1 + $0x8] sm:$0xff]  }
 0x455   : > { %911 = vst.msk [vmem:[%s2371_s22 + $0x4] sm:$0xf] %vm909_vm6, %v906_v12  ;;  %1761 = vmatmul.mubr.msk.bf16.vlgmr.msra.gmra.mrb[12].mxu0 %vm860_vm4, %v906_v12  ;;  %v1913_v12 = vld [vmem:[%s2365_s26 + $0x8] sm:$0xff]  }
 0x456   : > { %1771 = vmatpush3.bf16.msra.mxu0 %v1065_v18  ;;  %1772 = vmatprep.mubr.msk.bf16.mxu0 %vm2121_vm1, %v2120_v3 }
 0x457   : > { %1784 = vmatprep.subr.bf16.mxu0 %v2120_v3 }
 0x458   : > { %v1927_v21 = vpop.eup %1926 }
 0x459   : > { %v904_v22 = vmul.f32 %v1927_v21, %v1919_v61 }
 0x45b   : > { %v908_v23 = vpack.c.bf16 %v904_v22, %v904_v22 }
 0x45d   : > { %913 = vst.msk [vmem:[%s2371_s22 + $0xc] sm:$0xf] %vm909_vm6, %v908_v23  ;;  %1773 = vmatmul.mubr.msk.bf16.vlgmr.msra.gmra.mrb[16].mxu0 %vm860_vm4, %v908_v23 }
 0x45e   : > { %1788 = vmatprep.mubr.msk.bf16.mxu0 %vm2121_vm1, %v2120_v3  ;;  %1785 = vmatpush3.bf16.msra.mxu0 %v1910_v17 }
 0x45f   : > { %1786 = vmatprep.subr.bf16.mxu0 %v2120_v3 }
 0x462   : > { %1787 = vmatpush3.bf16.msra.mxu0 %v1911_v19 }
 0x47a   : > { %v887_v24 = vpop.xlane.xlu1 %886 }
 0x47b   : > { %1928 = vrcp.f32 %v887_v24 }
 0x47e   : > { %v915_v25 = vpop.permute.xlu1 %914 }
 0x47f   : > { %v921_v26 = vsel %vm919_vm5, %v915_v25, 0 }
 0x480   : > { %1753 = vmatpush3.bf16.msra.mxu1 %v921_v26 }
 0x481   : > { %1764 = vmatprep.subr.bf16.mxu1 %v2120_v3 }
 0x482   : > { %v893_v27 = vpop.xlane.xlu0 %892 }
 0x483   : > { %1930 = vrcp.f32 %v893_v27  ;;  %v1662_v27 = vld [vmem:[%s2649_s25] ss:$0 sm:$0xff] }
 0x485   : > { %v1929_v28 = vpop.eup %1928 }
 0x486   : > { %v901_v29 = vmul.f32 %v1929_v28, %v1921_v8  ;;  %v1012_v30 = vpop.permute.xlu0 %1011 }
 0x487   : > { %v1017_v32 = vsel %vm919_vm5, %v1012_v30, 0 }
 0x488   : > { %v905_v31 = vpack.c.bf16 %v901_v29, %v901_v29 }
 0x48a   : > { %910 = vst.msk [vmem:[%s2371_s22] sm:$0xf] %vm909_vm6, %v905_v31  ;;  %1755 = vmatmul.mubr.msk.bf16.vlgmr.msra.gmra.mrb[8].mxu1 %vm860_vm4, %v905_v31 }
 0x48b   : > { %1765 = vmatpush3.bf16.msra.mxu1 %v1017_v32  ;;  %1766 = vmatprep.mubr.msk.bf16.mxu1 %vm2121_vm1, %v2120_v3  ;;  %v1663_v32 = vld [vmem:[%s550_s19] ss:$0 sm:$0xff] }
 0x48c   : > { %1776 = vmatprep.subr.bf16.mxu1 %v2120_v3 }
 0x48d   : > { %v1931_v33 = vpop.eup %1930 }
 0x48e   : > { %v903_v34 = vmul.f32 %v1931_v33, %v1923_v10 }
 0x490   : > { %v907_v35 = vpack.c.bf16 %v903_v34, %v903_v34 }
 0x492   : > { %912 = vst.msk [vmem:[%s2371_s22 + $0x8] sm:$0xf] %vm909_vm6, %v907_v35  ;;  %1767 = vmatmul.mubr.msk.bf16.vlgmr.msra.gmra.mrb[12].mxu1 %vm860_vm4, %v907_v35 }
 0x493   : > { %1780 = vmatprep.mubr.msk.bf16.mxu1 %vm2121_vm1, %v2120_v3  ;;  %1777 = vmatpush3.bf16.msra.mxu1 %v1908_v36 }
 0x494   : > { %1778 = vmatprep.subr.bf16.mxu1 %v2120_v3 }
 0x497   : > { %1779 = vmatpush3.bf16.msra.mxu1 %v1909_v37  ;;  %v1914_v37 = vld [vmem:[%s2365_s26 + $0x10] sm:$0xff]  }
 0x498   : > { %1792 = vmatprep.subr.bf16.mxu1 %v2120_v3 }
 0x528   : > { %v1005_v38 = vpop.f32.mrb[12].mxu0 }
 0x529   : > { %v1762_v39 = vpop.f32.mrb[13].mxu0 }
 0x52a   : > { %v1008_v40 = vpop.f32.mrb[14].mxu0 }
 0x52b   : > { %v1763_v41 = vpop.f32.mrb[15].mxu0 }
 0x530   : > { %v1101_v42 = vpop.f32.mrb[16].mxu0 }
 0x531   : > { %v1901_v43 = vpack.i.bf16 %v1101_v42, %v1005_v38  ;;  %v1774_v44 = vpop.f32.mrb[17].mxu0  ;;  %v1915_v38 = vld [vmem:[%s2365_s26 + $0x18] sm:$0xff]   ;;  %s2650_s26 = sand.u32 1, %s2096_s18  }
 0x532   : > { %v1104_v45 = vpop.f32.mrb[18].mxu0  ;;  %s2518_s16 = scalar_lea.sflag [#allocation9], %s2650_s26 }
 0x533   : > { %1902 = vrot.lane.b32.xlu1 %v1901_v43, %s2125_s24  ;;  %v1775_v46 = vpop.f32.mrb[19].mxu0 }
 0x55d   : > { %v957_v47 = vpop.f32.mrb[8].mxu1 }
 0x55e   : > { %v1756_v48 = vpop.f32.mrb[9].mxu1 }
 0x55f   : > { %v960_v49 = vpop.f32.mrb[10].mxu1 }
 0x560   : > { %v1757_v50 = vpop.f32.mrb[11].mxu1 }
 0x565   : > { %v1053_v51 = vpop.f32.mrb[12].mxu1 }
 0x566   : > { %v1768_v52 = vpop.f32.mrb[13].mxu1 }
 0x567   : > { %v1056_v53 = vpop.f32.mrb[14].mxu1 }
 0x568   : > { %v1769_v54 = vpop.f32.mrb[15].mxu1 }
 0x5a5   : > { %v1903_v55 = vpop.permute.xlu1 %1902 }
 0x5a6   : > { %v1905_v56 = vunpack.i.h.bf16 %v1903_v55  ;;  %v1904_v57 = vunpack.i.l.bf16 %v1903_v55 }
 0x5a8   : > { %v1116_v58 = vsel %vm658_vm3, %v1053_v51, %v1905_v56  ;;  %v1115_v59 = vsel %vm658_vm3, %v957_v47, %v1904_v57 }
 0x5a9   : > { %v1117_v60 = vpack.c.bf16 %v1116_v58, %v1115_v59 }
 0x5ab   : > { %1781 = vmatmul.mubr.msk.bf16.vlgmr.msra.gmra.mrb[16].mxu1 %vm598_vm2, %v1117_v60 }
 0x5ac   : > { %1800 = vmatprep.mubr.msk.bf16.mxu1 %vm2121_vm1, %v2120_v3  ;;  %1793 = vmatpush3.bf16.msra.mxu1 %v1912_v20 }
 0x5ad   : > { %1794 = vmatprep.subr.bf16.mxu1 %v2120_v3 }
 0x5b0   : > { %1795 = vmatpush3.bf16.msra.mxu1 %v1913_v12 }
 0x5b1   : > { %1796 = vmatprep.subr.bf16.mxu1 %v2120_v3 }
 0x5b4   : > { %1797 = vmatpush3.bf16.msra.mxu1 %v1914_v37 }
 0x5b5   : > { %1798 = vmatprep.subr.bf16.mxu1 %v2120_v3 }
 0x5b8   : > { %1799 = vmatpush3.bf16.msra.mxu1 %v1915_v38 }
 0x67e   : > { %v1171_v61 = vpop.f32.mrb[16].mxu1 }
 0x67f   : > { %v1172_v62 = vadd.f32 %v1171_v61, %v2378_v5  ;;  %v1782_v63 = vpop.f32.mrb[17].mxu1 }
 0x680   : > { %v1174_v0 = vpop.f32.mrb[18].mxu1 }
 0x681   : > { %v1175_v1 = vadd.f32 %v1174_v0, %v2380_v6  ;;  %v1783_v2 = vpop.f32.mrb[19].mxu1  ;;  %v1178_v4 = vsel %vm598_vm2, %v1172_v62, 0.0 }
 0x682   : > { %1179 = vadd.xlane.f32.xlu1 %v1178_v4 }
 0x683   : > { %v1181_v7 = vsel %vm598_vm2, %v1175_v1, 0.0 }
 0x684   : > { %1182 = vadd.xlane.f32.xlu0 %v1181_v7 }
 0x70f   : > { %v1180_v8 = vpop.xlane.xlu1 %1179 }
 0x710   : > { %v1185_v9 = vmul.f32 0.03125, %v1180_v8 }
 0x711   : > { %v1183_v10 = vpop.xlane.xlu0 %1182 }
 0x712   : > { %v1187_v11 = vsub.f32 %v1172_v62, %v1185_v9  ;;  %v1186_v5 = vmul.f32 0.03125, %v1183_v10 }
 0x714   : > { %v1188_v13 = vsub.f32 %v1175_v1, %v1186_v5  ;;  %v1189_v14 = vmul.f32 %v1187_v11, %v1187_v11 }
 0x716   : > { %v1191_v6 = vsel %vm598_vm2, %v1189_v14, 0.0  ;;  %v1190_v15 = vmul.f32 %v1188_v13, %v1188_v13 }
 0x717   : > { %1192 = vadd.xlane.f32.xlu0 %v1191_v6 }
 0x718   : > { %v1194_v16 = vsel %vm598_vm2, %v1190_v15, 0.0 }
 0x719   : > { %1195 = vadd.xlane.f32.xlu1 %v1194_v16 }
 0x7a4   : > { %v1193_v18 = vpop.xlane.xlu0 %1192 }
 0x7a5   : > { %v1197_v21 = vmul.f32 0.03125, %v1193_v18 }
 0x7a6   : > { %v1196_v22 = vpop.xlane.xlu1 %1195 }
 0x7a7   : > { %v1199_v23 = vadd.f32 1e-05, %v1197_v21  ;;  %v1198_v24 = vmul.f32 0.03125, %v1196_v22 }
 0x7a9   : > { %1932 = vrsqrt.f32 %v1199_v23  ;;  %v1200_v25 = vadd.f32 1e-05, %v1198_v24 }
 0x7ab   : > { %1934 = vrsqrt.f32 %v1200_v25 }
 0x7b3   : > { %v1933_v26 = vpop.eup %1932 }
 0x7b4   : > { %v1203_v28 = vmul.f32 %v1933_v26, %v1187_v11 }
 0x7b5   : > { %v1935_v29 = vpop.eup %1934 }
 0x7b6   : > { %v1212_v30 = vmul.f32 %v1662_v27, %v1203_v28  ;;  %v1204_v31 = vmul.f32 %v1935_v29, %v1188_v13 }
 0x7b8   : > { %v1213_v33 = vmul.f32 %v1662_v27, %v1204_v31  ;;  %v1221_v34 = vadd.f32 %v1663_v32, %v1212_v30 }
 0x7ba   : > { %v1222_v35 = vadd.f32 %v1663_v32, %v1213_v33 }
 0x7bc   : > { %v1223_v36 = vpack.c.bf16 %v1222_v35, %v1221_v34 }
 0x7be   : > { %1789 = vmatmul.mubr.msk.bf16.vlgmr.msra.gmra.mrb[20].mxu0 %vm598_vm2, %v1223_v36 }
 0x891   : > { %v1277_v39 = vpop.f32.mrb[20].mxu0 }
 0x892   : > { %v1790_v40 = vpop.f32.mrb[21].mxu0  ;;  %v1284_v42 = vmax.f32 %v1277_v39, 0.0 }
 0x893   : > { %v1280_v41 = vpop.f32.mrb[22].mxu0 }
 0x894   : > { %v1285_v43 = vmax.f32 %v1280_v41, 0.0  ;;  %v1791_v44 = vpop.f32.mrb[23].mxu0 }
 0x896   : > { %v1286_v45 = vpack.c.bf16 %v1285_v43, %v1284_v42 }
 0x898   : > { %1801 = vmatmul.mubr.msk.bf16.vlgmr.msra.gmra.mrb[20].mxu1 %vm1319_vm7, %v1286_v45 }
 0x96b   : > { %v1357_v46 = vpop.f32.mrb[20].mxu1 }
 0x96c   : > { %v1358_v47 = vadd.f32 %v1357_v46, %v1221_v34  ;;  %v1802_v48 = vpop.f32.mrb[21].mxu1 }
 0x96d   : > { %v1360_v49 = vpop.f32.mrb[22].mxu1 }
 0x96e   : > { %v1361_v50 = vadd.f32 %v1360_v49, %v1222_v35  ;;  %v1803_v51 = vpop.f32.mrb[23].mxu1  ;;  %v1364_v52 = vsel %vm598_vm2, %v1358_v47, 0.0 }
 0x96f   : > { %1365 = vadd.xlane.f32.xlu0 %v1364_v52 }
 0x970   : > { %v1367_v3 = vsel %vm598_vm2, %v1361_v50, 0.0 }
 0x971   : > { %1368 = vadd.xlane.f32.xlu1 %v1367_v3 }
 0x9fc   : > { %v1366_v53 = vpop.xlane.xlu0 %1365 }
 0x9fd   : > { %v1370_v54 = vmul.f32 0.03125, %v1366_v53 }
 0x9fe   : > { %v1369_v55 = vpop.xlane.xlu1 %1368 }
 0x9ff   : > { %v1372_v56 = vsub.f32 %v1358_v47, %v1370_v54  ;;  %v1371_v57 = vmul.f32 0.03125, %v1369_v55 }
 0xa01   : > { %v1373_v58 = vsub.f32 %v1361_v50, %v1371_v57  ;;  %v1374_v59 = vmul.f32 %v1372_v56, %v1372_v56 }
 0xa03   : > { %v1376_v60 = vsel %vm598_vm2, %v1374_v59, 0.0  ;;  %v1375_v61 = vmul.f32 %v1373_v58, %v1373_v58 }
 0xa04   : > { %1377 = vadd.xlane.f32.xlu0 %v1376_v60 }
 0xa05   : > { %v1379_v62 = vsel %vm598_vm2, %v1375_v61, 0.0 }
 0xa06   : > { %1380 = vadd.xlane.f32.xlu1 %v1379_v62 }
 0xa07   : > { %2009 = shalt.err (!%p2006_p7)
}
 0xa08   : > { %s2010_s22 = scalar_lea.hbm %s2511_s14, 256  ;;  %s2014_s13 = scalar_lea.hbm %s2609_s11, 512 }
 0xa09   : > { %p2011_p9 = scmp.ne.s32.totalorder %s2511_s14, %s2010_s22  ;;  %p2015_p1 = scmp.lt.u32.totalorder %s2511_s14, %s2609_s11 }
 0xa0a   : > { %p2016_p13 = scmp.lt.u32.totalorder %s2014_s13, %s2010_s22  ;;  %p2018_p4 = scmp.lt.u32.totalorder %s2010_s22, %s2511_s14 }
 0xa0b   : > { %p2012_p12 = pnand %p2011_p9, %p2651_p8 }
 0xa0c   : > { %p2017_p2 = por %p2016_p13, %p2015_p1 }
 0xa0d   : > { %p2013_p0 = pneg %p2012_p12 }
 0xa0e   : > { %p2019_p10 = por %p2018_p4, %p2017_p2 }
 0xa10   : > { %p2020_p11 = pnand %p2019_p10, %p2013_p0 }
 0xa12   : > { %2023 = shalt.err (!%p2020_p11)
}
 0xa13   : > { %s2127_s15 = smov 64   ;;  %s2128_s10 = smov 4   ;;  %v1672_v9 = vld [vmem:[%s563_s12] ss:$0 sm:$0xff] }
 0xa14   : > { %1814 = dma.vmem_to_hbm [thread:$0]  (%p2651_p8), %s2514_s23, 256, %s2511_s14, %s2518_s16, %s2127_s15, %s2127_s15, %s2128_s10  }
 0xa15   : > { %v1673_v5 = vld [vmem:[%s566_s17] ss:$0 sm:$0xff]  ;;  %s2129_s14 = smov [#allocation7]   ;;  %p2652_p3 = scmp.ne.s32.totalorder %s2634_s27, 0 }
 0xa16   : > { %s1424_s23 = sshll.u32 %s2129_s14, 4  ;;  %s1425_s23 = int_to_ptr.vmem [resolvable:$true] %s1424_s23 }
 0xa17   : > { %s2024_s12 = scalar_lea.vmem %s1425_s23, 256  ;;  %p2031_p7 = scmp.lt.s32.totalorder %s1425_s23, %s1425_s23 }
 0xa18   : > { %p2025_p8 = scmp.ne.s32.totalorder %s1425_s23, %s2024_s12  ;;  %p2032_p9 = scmp.lt.s32.totalorder %s2024_s12, %s2024_s12 }
 0xa1a   : > { %p2026_p5 = pnand %p2025_p8, %p2652_p3  ;;  %p2033_p12 = por %p2032_p9, %p2031_p7 }
 0xa1c   : > { %p2027_p6 = pneg %p2026_p5 }
 0xa1e   : > { %p2034_p0 = pnand %p2033_p12, %p2027_p6 }
 0xa91   : > { %v1378_v63 = vpop.xlane.xlu0 %1377 }
 0xa92   : > { %v1382_v0 = vmul.f32 0.03125, %v1378_v63 }
 0xa93   : > { %v1381_v1 = vpop.xlane.xlu1 %1380 }
 0xa94   : > { %v1384_v2 = vadd.f32 1e-05, %v1382_v0  ;;  %v1383_v4 = vmul.f32 0.03125, %v1381_v1 }
 0xa96   : > { %1936 = vrsqrt.f32 %v1384_v2  ;;  %v1385_v7 = vadd.f32 1e-05, %v1383_v4 }
 0xa98   : > { %1938 = vrsqrt.f32 %v1385_v7 }
 0xaa0   : > { %v1937_v8 = vpop.eup %1936 }
 0xaa1   : > { %v1388_v10 = vmul.f32 %v1937_v8, %v1372_v56 }
 0xaa2   : > { %v1939_v11 = vpop.eup %1938 }
 0xaa3   : > { %v1389_v13 = vmul.f32 %v1939_v11, %v1373_v58  ;;  %v1397_v14 = vmul.f32 %v1672_v9, %v1388_v10 }
 0xaa5   : > { %v1398_v6 = vmul.f32 %v1672_v9, %v1389_v13  ;;  %v1406_v15 = vadd.f32 %v1673_v5, %v1397_v14 }
 0xaa7   : > { %v1407_v16 = vadd.f32 %v1673_v5, %v1398_v6  ;;  %1408 = vst.msk [vmem:[#allocation7] sm:$0xff] %vm598_vm2, %v1406_v15 }
 0xaa9   : > { %1409 = vst.msk [vmem:[#allocation7 + $0x8] sm:$0xff] %vm598_vm2, %v1407_v16 }
 0xaaa   : > { %2037 = shalt.err (!%p2034_p0)
}
 0xaab   : > { %s2653_s16 = sld [smem:[#allocation25_spill]] }
 0xab1   : > { %s2038_s0 = scalar_lea.hbm %s2653_s16, 256 }
 0xab2   : > { %p2039_p1 = scmp.ne.s32.totalorder %s2653_s16, %s2038_s0  ;;  %p2044_p4 = scmp.lt.u32.totalorder %s2038_s0, %s2653_s16 }
 0xab4   : > { %p2040_p13 = pnand %p2039_p1, %p2652_p3 }
 0xab6   : > { %p2041_p2 = pneg %p2040_p13 }
 0xab8   : > { %p2046_p10 = pnand %p2044_p4, %p2041_p2 }
 0xaba   : > { %2049 = shalt.err (!%p2046_p10)
}
 0xabb   : > { %s2130_s24 = smov 128   ;;  %s2131_s1 = smov 8  }
 0xabc   : > { %1813 = dma.vmem_to_hbm [thread:$0]  (%p2652_p3), %s1425_s23, 256, %s2653_s16, [#allocation4], %s2130_s24, %s2130_s24, %s2131_s1  }
 0xabd   : > { %2083 = dma.done.wait (%p2652_p3), [#allocation4], 256  }
 0xabe   : > { %2085 = vsyncadd (%p2652_p3), [#allocation4], 4294967040 }
 0xabf PF: > { %s2654_s30 = sld [smem:[#allocation17_spill]]  ;;  %s2655_s15 = sld [smem:[#allocation14_spill]] }
 0xac0   : > { %s2656_s10 = sld [smem:[#allocation19_spill]] }
 0xac5   : > { %p1835_p11 = scmp.ge.s32.totalorder %s2654_s30, 2  ;;  %s1462_s19 = sand.u32 1, %s2655_s15  }
 0xac6   : > { %p2657_p8 = scmp.ne.s32.totalorder %s2656_s10, 0  ;;  %s1463_s21 = scalar_lea.sflag [#allocation9], %s1462_s19 }
 0xac8   : > { %p1826_p5 = pnand %p1835_p11, %p2657_p8 }
 0xaca   : > { %2087 = dma.done.wait (!%p1826_p5), %s1463_s21, 256  }
 0xacb   : > { %2089 = vsyncadd (!%p1826_p5), %s1463_s21, 4294967040  ;;  %s28_s22 = sadd.s32 1, %s2654_s30   ;;  %s2658_s26 = sld [smem:[#allocation15_spill]] }
 0xacc   : > { %p25_p6 = scmp.ge.s32.totalorder %s28_s22, 4   ;;  %s2659_s19 = sld [smem:[#allocation20_spill]] }
 0xacd   : > { %s2660_s20 = sld [smem:[#allocation16_spill]]  ;;  %s2661_s21 = sld [smem:[#allocation18_spill]] }
 0xace   : > { %s2662_s17 = smov %s2096_s18  ;;  %27 = sbr.rel (!%p25_p6) target bundleno = 13 (0xd), region = 141 }
 0xad1   : > { %s2663_s18 = smov %s2658_s26 }
 0xad5   :  { %1468 = vsyncpa [#allocation3], 1 }
 0xad6   :  { %1470 = vsyncpa [#allocation3 + $0x1], 1 }
 0xad7   :  { %1471 = vsyncpa [#allocation6], 1 }
 0xad8   :  { %1472 = vsyncpa [#allocation4], 1 }
 0xad9   :  { %1474 = vsyncpa [#allocation4 + $0x1], 1 }
 0xada   :  { %1475 = vsyncpa [#allocation9], 1 }
 0xadb   :  { %1477 = vsyncpa [#allocation9 + $0x1], 1 }

</bundles_post_ra>
